<compile_context>
chip_gen: v5e
topology: v5e:2x2
jax: 0.10.0
libtpu: 0.0.40
codegen_flags: <defaults>
</compile_context>

<pallas_src>
import jax
import jax.numpy as jnp
from jax.experimental import pallas as pl
from jax.experimental.pallas import tpu as pltpu
import numpy as np

LARGEUR = 100
IN_F = 13
OUT_F = 3

H_PAD = 128        # hidden 100 -> 128 lanes (zero-padded, exact)
OUT_PAD = 8        # output 3 -> 8 lanes: one masked vreg store, 32 B/row writeback
TB_MAX = 4096      # max batch-tile rows (keeps VMEM footprint at a few MiB)
SPLIT_MIN = 64     # beyond this, use >= 2 grid steps so both v7x TensorCores get work


def _cdiv(a, b):
    return -(-a // b)


def _round_up(n, m):
    return _cdiv(n, m) * m


def _batch_tiling(B):
    """Pick (tb, B_pad, n_tiles): tb multiple of 8, pad waste < 8*n_tiles rows,
    and >= 2 tiles for large B (v7x megacore)."""
    n_tiles = _cdiv(B, TB_MAX)
    if B >= SPLIT_MIN:
        n_tiles = max(n_tiles, 2)
    tb = _round_up(_cdiv(B, n_tiles), 8)
    return tb, n_tiles * tb, n_tiles


def _mlp_kernel(x_ref, w1_ref, b1_ref, w2_ref, b2_ref, w3_ref, b3_ref, o_ref):
    # x arrives as f32 (tb, 13); cast to bf16 in-kernel (no wrapper pad/cast pass).
    x = x_ref[...].astype(jnp.bfloat16)
    # layer 1: ReLU(x @ W1 + b1) — bf16 MXU operands, f32 accumulate, f32 epilogue
    h1 = jnp.dot(x, w1_ref[...], preferred_element_type=jnp.float32)
    h1 = jnp.maximum(h1 + b1_ref[...], 0.0)
    # layer 2: ReLU(h1 @ W2 + b2)
    h2 = jnp.dot(h1.astype(jnp.bfloat16), w2_ref[...],
                 preferred_element_type=jnp.float32)
    h2 = jnp.maximum(h2 + b2_ref[...], 0.0)
    # layer 3: h2 @ W3 + b3 (no activation); lane-narrow (tb, 8) f32 output
    o = jnp.dot(h2.astype(jnp.bfloat16), w3_ref[...],
                preferred_element_type=jnp.float32)
    o_ref[...] = o + b3_ref[...]


def nn_2j_forward(x, params):
    """x: (B, 13) float32. params: padded bf16 weights + f32 biases (see init_params)."""
    B = x.shape[0]
    tb, B_pad, n_tiles = _batch_tiling(B)

    if B_pad != B:
        # Zero batch rows are exact and sliced off below.
        x = jnp.pad(x, ((0, B_pad - B), (0, 0)))

    out_pad = pl.pallas_call(
        _mlp_kernel,
        out_shape=jax.ShapeDtypeStruct((B_pad, OUT_PAD), jnp.float32),
        grid=(n_tiles,),
        in_specs=[
            pl.BlockSpec((tb, IN_F), lambda i: (i, 0)),        # x tile (pipelined), f32
            pl.BlockSpec((IN_F, H_PAD), lambda i: (0, 0)),     # W1 (VMEM-resident)
            pl.BlockSpec((1, H_PAD), lambda i: (0, 0)),        # b1
            pl.BlockSpec((H_PAD, H_PAD), lambda i: (0, 0)),    # W2
            pl.BlockSpec((1, H_PAD), lambda i: (0, 0)),        # b2
            pl.BlockSpec((H_PAD, OUT_PAD), lambda i: (0, 0)),  # W3
            pl.BlockSpec((1, OUT_PAD), lambda i: (0, 0)),      # b3
        ],
        out_specs=pl.BlockSpec((tb, OUT_PAD), lambda i: (i, 0)),
        compiler_params=pltpu.CompilerParams(
            dimension_semantics=("parallel",),   # independent batch tiles (v7x 2-TC sharding)
            # Actual footprint: ~0.7 MiB I/O tiles (2x buffered) + ~70 KiB weights
            # + ~6 MiB f32/bf16 intermediates at tb=4096 — 32 MiB is safe on v5e/v6e/v7x.
            vmem_limit_bytes=32 * 1024 * 1024,
        ),
    )(x, params["w1"], params["b1"], params["w2"], params["b2"],
      params["w3"], params["b3"])

    return out_pad[:B, :OUT_F]


def _init_linear(key, fan_in, fan_out):
    """PyTorch-style nn.Linear init: U(-1/sqrt(fan_in), 1/sqrt(fan_in))."""
    kw, kb = jax.random.split(key)
    bound = 1.0 / np.sqrt(fan_in)
    w = jax.random.uniform(kw, (fan_in, fan_out), jnp.float32, -bound, bound)
    b = jax.random.uniform(kb, (fan_out,), jnp.float32, -bound, bound)
    return w, b


def init_params(key):
    k1, k2, k3 = jax.random.split(key, 3)
    w1, b1 = _init_linear(k1, IN_F, LARGEUR)
    w2, b2 = _init_linear(k2, LARGEUR, LARGEUR)
    w3, b3 = _init_linear(k3, LARGEUR, OUT_F)

    def pad_w(w, in_pad, out_pad):
        wp = jnp.zeros((in_pad, out_pad), jnp.float32).at[:w.shape[0], :w.shape[1]].set(w)
        return wp.astype(jnp.bfloat16)

    def pad_b(b, out_pad):
        return jnp.zeros((1, out_pad), jnp.float32).at[0, :b.shape[0]].set(b)

    params = dict(
        w1=pad_w(w1, IN_F, H_PAD),  b1=pad_b(b1, H_PAD),      # (13, 128) bf16
        w2=pad_w(w2, H_PAD, H_PAD), b2=pad_b(b2, H_PAD),      # (128, 128) bf16
        w3=pad_w(w3, H_PAD, OUT_PAD), b3=pad_b(b3, OUT_PAD),  # (128, 8) bf16
    )
    raw = dict(w1=w1, b1=b1, w2=w2, b2=b2, w3=w3, b3=b3)
    return params, raw


def reference_f32(x, raw):
    h1 = jnp.maximum(x @ raw["w1"] + raw["b1"], 0.0)
    h2 = jnp.maximum(h1 @ raw["w2"] + raw["b2"], 0.0)
    return h2 @ raw["w3"] + raw["b3"]


def reference_bf16(x, raw):
    """Mirrors the kernel's bf16-operand / f32-accumulate numerics."""
    bf = jnp.bfloat16
    h1 = jnp.dot(x.astype(bf), raw["w1"].astype(bf),
                 preferred_element_type=jnp.float32) + raw["b1"]
    h1 = jnp.maximum(h1, 0.0)
    h2 = jnp.dot(h1.astype(bf), raw["w2"].astype(bf),
                 preferred_element_type=jnp.float32) + raw["b2"]
    h2 = jnp.maximum(h2, 0.0)
    return jnp.dot(h2.astype(bf), raw["w3"].astype(bf),
                   preferred_element_type=jnp.float32) + raw["b3"]


if __name__ == "__main__":
    key = jax.random.PRNGKey(0)
    kx1, kx2, kp = jax.random.split(key, 3)
    params, raw = init_params(kp)

    # B=8  -> single-tile path (no batch padding).
    # B=70 -> 2-tile "parallel" path with batch padding (exercises v7x split + tail pad).
    for B, kk in ((8, kx1), (70, kx2)):
        x = jax.random.normal(kk, (B, IN_F), jnp.float32)
        out = jax.block_until_ready(nn_2j_forward(x, params))
        assert out.shape == (B, OUT_F), out.shape

        # Tight check against a reference with identical bf16/f32-accumulate numerics.
        np.testing.assert_allclose(np.asarray(out), np.asarray(reference_bf16(x, raw)),
                                   rtol=2e-3, atol=2e-3)
        # Loose sanity check against the pure-f32 PyTorch-equivalent forward.
        np.testing.assert_allclose(np.asarray(out), np.asarray(reference_f32(x, raw)),
                                   rtol=5e-2, atol=5e-2)

    print("KERNEL_OK")
</pallas_src>

<mosaic_0001>
module attributes {stable_mosaic.version = 11 : i64} {
  func.func @_mlp_kernel(%arg0: i32, %arg1: memref<8x13xf32, #tpu.memory_space<vmem>>, %arg2: memref<13x128xbf16, #tpu.memory_space<vmem>>, %arg3: memref<1x128xf32, #tpu.memory_space<vmem>>, %arg4: memref<128x128xbf16, #tpu.memory_space<vmem>>, %arg5: memref<1x128xf32, #tpu.memory_space<vmem>>, %arg6: memref<128x8xbf16, #tpu.memory_space<vmem>>, %arg7: memref<1x8xf32, #tpu.memory_space<vmem>>, %arg8: memref<8x8xf32, #tpu.memory_space<vmem>>) attributes {dimension_semantics = [#tpu.dimension_semantics<parallel>], iteration_bounds = array<i64: 1>, scalar_prefetch = 0 : i64, scratch_operands = 0 : i64, tpu.core_type = #tpu.core_type<tc>, window_params = [{transform_indices = @transform_0, window_bounds = array<i64: 8, 13>}, {pipeline_mode = #tpu.pipeline_mode<synchronous>, transform_indices = @transform_1, window_bounds = array<i64: 13, 128>}, {pipeline_mode = #tpu.pipeline_mode<synchronous>, transform_indices = @transform_2, window_bounds = array<i64: 1, 128>}, {pipeline_mode = #tpu.pipeline_mode<synchronous>, transform_indices = @transform_3, window_bounds = array<i64: 128, 128>}, {pipeline_mode = #tpu.pipeline_mode<synchronous>, transform_indices = @transform_4, window_bounds = array<i64: 1, 128>}, {pipeline_mode = #tpu.pipeline_mode<synchronous>, transform_indices = @transform_5, window_bounds = array<i64: 128, 8>}, {pipeline_mode = #tpu.pipeline_mode<synchronous>, transform_indices = @transform_6, window_bounds = array<i64: 1, 8>}, {transform_indices = @transform_7, window_bounds = array<i64: 8, 8>}]} {
    %c0 = arith.constant 0 : index
    %c0_0 = arith.constant 0 : index
    %0 = vector.load %arg1[%c0, %c0_0] : memref<8x13xf32, #tpu.memory_space<vmem>>, vector<8x13xf32>
    %1 = arith.truncf %0 : vector<8x13xf32> to vector<8x13xbf16>
    %c0_1 = arith.constant 0 : index
    %c0_2 = arith.constant 0 : index
    %2 = vector.load %arg2[%c0_1, %c0_2] : memref<13x128xbf16, #tpu.memory_space<vmem>>, vector<13x128xbf16>
    %cst = arith.constant dense<0.000000e+00> : vector<8x128xf32>
    %3 = tpu.matmul %1, %2, %cst {dimension_numbers = #tpu.dot_dimension_numbers<[1], [0], [0], [1], [0, 0, 1, 1], [], []>} : vector<8x13xbf16>, vector<13x128xbf16>, vector<8x128xf32> -> vector<8x128xf32>
    %c0_3 = arith.constant 0 : index
    %c0_4 = arith.constant 0 : index
    %4 = vector.load %arg3[%c0_3, %c0_4] : memref<1x128xf32, #tpu.memory_space<vmem>>, vector<1x128xf32>
    %5 = vector.broadcast %4 : vector<1x128xf32> to vector<8x128xf32>
    %6 = arith.addf %3, %5 : vector<8x128xf32>
    %cst_5 = arith.constant 0.000000e+00 : f32
    %7 = vector.broadcast %cst_5 : f32 to vector<8x128xf32>
    %8 = arith.maximumf %6, %7 : vector<8x128xf32>
    %9 = arith.truncf %8 : vector<8x128xf32> to vector<8x128xbf16>
    %c0_6 = arith.constant 0 : index
    %c0_7 = arith.constant 0 : index
    %10 = vector.load %arg4[%c0_6, %c0_7] : memref<128x128xbf16, #tpu.memory_space<vmem>>, vector<128x128xbf16>
    %cst_8 = arith.constant dense<0.000000e+00> : vector<8x128xf32>
    %11 = tpu.matmul %9, %10, %cst_8 {dimension_numbers = #tpu.dot_dimension_numbers<[1], [0], [0], [1], [0, 0, 1, 1], [], []>} : vector<8x128xbf16>, vector<128x128xbf16>, vector<8x128xf32> -> vector<8x128xf32>
    %c0_9 = arith.constant 0 : index
    %c0_10 = arith.constant 0 : index
    %12 = vector.load %arg5[%c0_9, %c0_10] : memref<1x128xf32, #tpu.memory_space<vmem>>, vector<1x128xf32>
    %13 = vector.broadcast %12 : vector<1x128xf32> to vector<8x128xf32>
    %14 = arith.addf %11, %13 : vector<8x128xf32>
    %cst_11 = arith.constant 0.000000e+00 : f32
    %15 = vector.broadcast %cst_11 : f32 to vector<8x128xf32>
    %16 = arith.maximumf %14, %15 : vector<8x128xf32>
    %17 = arith.truncf %16 : vector<8x128xf32> to vector<8x128xbf16>
    %c0_12 = arith.constant 0 : index
    %c0_13 = arith.constant 0 : index
    %18 = vector.load %arg6[%c0_12, %c0_13] : memref<128x8xbf16, #tpu.memory_space<vmem>>, vector<128x8xbf16>
    %cst_14 = arith.constant dense<0.000000e+00> : vector<8x8xf32>
    %19 = tpu.matmul %17, %18, %cst_14 {dimension_numbers = #tpu.dot_dimension_numbers<[1], [0], [0], [1], [0, 0, 1, 1], [], []>} : vector<8x128xbf16>, vector<128x8xbf16>, vector<8x8xf32> -> vector<8x8xf32>
    %c0_15 = arith.constant 0 : index
    %c0_16 = arith.constant 0 : index
    %20 = vector.load %arg7[%c0_15, %c0_16] : memref<1x8xf32, #tpu.memory_space<vmem>>, vector<1x8xf32>
    %21 = vector.broadcast %20 : vector<1x8xf32> to vector<8x8xf32>
    %22 = arith.addf %19, %21 : vector<8x8xf32>
    %c0_17 = arith.constant 0 : index
    %c0_18 = arith.constant 0 : index
    %23 = vector.load %arg8[%c0_17, %c0_18] : memref<8x8xf32, #tpu.memory_space<vmem>>, vector<8x8xf32>
    tpu.vector_store %arg8[%c0_17, %c0_18], %22 {strides = array<i32>} : memref<8x8xf32, #tpu.memory_space<vmem>>, vector<8x8xf32>,
    return
  }
  func.func @transform_0(%arg0: i32) -> (i32, i32) {
    %c0_i32 = arith.constant 0 : i32
    %c0_i32_0 = arith.constant 0 : i32
    return %arg0, %c0_i32 : i32, i32
  }
  func.func @transform_1(%arg0: i32) -> (i32, i32) {
    %c0_i32 = arith.constant 0 : i32
    %c0_i32_0 = arith.constant 0 : i32
    %c0_i32_1 = arith.constant 0 : i32
    return %c0_i32, %c0_i32_0 : i32, i32
  }
  func.func @transform_2(%arg0: i32) -> (i32, i32) {
    %c0_i32 = arith.constant 0 : i32
    %c0_i32_0 = arith.constant 0 : i32
    %c0_i32_1 = arith.constant 0 : i32
    return %c0_i32, %c0_i32_0 : i32, i32
  }
  func.func @transform_3(%arg0: i32) -> (i32, i32) {
    %c0_i32 = arith.constant 0 : i32
    %c0_i32_0 = arith.constant 0 : i32
    %c0_i32_1 = arith.constant 0 : i32
    return %c0_i32, %c0_i32_0 : i32, i32
  }
  func.func @transform_4(%arg0: i32) -> (i32, i32) {
    %c0_i32 = arith.constant 0 : i32
    %c0_i32_0 = arith.constant 0 : i32
    %c0_i32_1 = arith.constant 0 : i32
    return %c0_i32, %c0_i32_0 : i32, i32
  }
  func.func @transform_5(%arg0: i32) -> (i32, i32) {
    %c0_i32 = arith.constant 0 : i32
    %c0_i32_0 = arith.constant 0 : i32
    %c0_i32_1 = arith.constant 0 : i32
    return %c0_i32, %c0_i32_0 : i32, i32
  }
  func.func @transform_6(%arg0: i32) -> (i32, i32) {
    %c0_i32 = arith.constant 0 : i32
    %c0_i32_0 = arith.constant 0 : i32
    %c0_i32_1 = arith.constant 0 : i32
    return %c0_i32, %c0_i32_0 : i32, i32
  }
  func.func @transform_7(%arg0: i32) -> (i32, i32) {
    %c0_i32 = arith.constant 0 : i32
    %c0_i32_0 = arith.constant 0 : i32
    return %arg0, %c0_i32 : i32, i32
  }
}

</mosaic_0001>

<bundles_post_ra>
// kernel: tpu_custom_call.1
= control target key start
LH: loop header
LB: loop body
LE: loop exit
PB: predicated region body
PF: predicated region fallthrough
CT: control target
= control target key end

     0   :  { %12 = vsyncpa [#allocation3], 0  ;;  %s566_s0 = inlined_call_operand.hbm [shape: f32[8,13], index: 0, kind: input, shape index: {}]   ;;  %s567_s1 = inlined_call_operand.hbm [shape: bf16[13,128], index: 1, kind: input, shape index: {}]   ;;  %s568_s2 = inlined_call_operand.vmem [shape: f32[1,128], index: 2, kind: input, shape index: {}]   ;;  %s569_s3 = inlined_call_operand.vmem [shape: bf16[128,128], index: 3, kind: input, shape index: {}]   ;;  %s570_s4 = inlined_call_operand.vmem [shape: f32[1,128], index: 4, kind: input, shape index: {}]   ;;  %s571_s5 = inlined_call_operand.vmem [shape: bf16[128,8], index: 5, kind: input, shape index: {}]   ;;  %s572_s6 = inlined_call_operand.vmem [shape: f32[1,8], index: 6, kind: input, shape index: {}]   ;;  %s573_s7 = inlined_call_operand.hbm [shape: f32[8,8], index: 7, kind: output, shape index: {}]  }
   0x1   :  { %13 = vsyncpa [#allocation6], 0 }
   0x2   :  { %14 = vsyncpa [#allocation4], 0  ;;  %s20_s26 = sshll.u32 %s566_s0, 4  ;;  %s454_s27 = smov [#allocation2]   ;;  %s21_s26 = int_to_ptr.hbm [resolvable:$true] %s20_s26 }
   0x3   :  { %s22_s28 = sshll.u32 %s454_s27, 4  ;;  %s30_s8 = sshll.u32 %s567_s1, 4  ;;  %s23_s28 = int_to_ptr.vmem [resolvable:$true] %s22_s28  ;;  %s31_s8 = int_to_ptr.hbm [resolvable:$true] %s30_s8 }
   0x4   :  { %25 = dma.hbm_to_vmem [thread:$0]  %s21_s26, 128, %s23_s28, [#allocation3]  }
   0x5   :  { %s455_s9 = smov [#allocation5]   ;;  %s456_s11 = smov 64  }
   0x6   :  { %s32_s10 = sshll.u32 %s455_s9, 4  ;;  %s457_s12 = smov 4   ;;  %s33_s10 = int_to_ptr.vmem [resolvable:$true] %s32_s10 }
   0x7   :  { %38 = dma.hbm_to_vmem [thread:$0]  %s31_s8, 128, %s33_s10, [#allocation6], %s456_s11, %s456_s11, %s457_s12  }
   0x8   :  { %448 = dma.done.wait [#allocation3], 128  }
   0x9   :  { %449 = vsyncadd [#allocation3], 4294967168 }
   0xa   :  { %450 = dma.done.wait [#allocation6], 128  }
   0xb   :  { %451 = vsyncadd [#allocation6], 4294967168  ;;  %vm75_vm0 = vcmask 1045504   ;;  %vm76_vm1 = vcmask 1046528   ;;  %v458_v0 = vmov 65535   ;;  %v58_v6 = vld [vmem:[#allocation2] sm:$0xff] }
   0xc   :  { %v77_v1 = vsel %vm75_vm0, 4294967295, %v458_v0  ;;  %v283_v2 = vld [vmem:[#allocation5] sm:$0xf]  ;;  %v350_v3 = vld [vmem:[#allocation5] sm:$0x70]  ;;  %v358_v7 = vld [vmem:[%s569_s3 + $0x38] sm:$0xff]  ;;  %v59_v10 = vpack.c.bf16 %v58_v6, %v58_v6 }
   0xd   :  { %v78_v4 = vsel %vm76_vm1, %v77_v1, 0  ;;  %v284_v5 = vor.u32 %v350_v3, %v283_v2  ;;  %165 = vmatpush.bf16.msra.mxu1 %v358_v7  ;;  %v357_v9 = vld [vmem:[%s569_s3 + $0x30] sm:$0xff]  ;;  %vm71_vm2 = vcmask 105472   ;;  %v356_v11 = vld [vmem:[%s569_s3 + $0x28] sm:$0xff]  ;;  %v355_v12 = vld [vmem:[%s569_s3 + $0x20] sm:$0xff]  ;;  %s459_s22 = smov [#allocation7]  }
   0xe   :  { %v354_v13 = vld [vmem:[%s569_s3 + $0x18] sm:$0xff]  ;;  %v353_v14 = vld [vmem:[%s569_s3 + $0x10] sm:$0xff]  ;;  %v352_v15 = vld [vmem:[%s569_s3 + $0x8] sm:$0xff]  ;;  %s268_s23 = sshll.u32 %s459_s22, 4  ;;  %vm261_vm3 = vcmask 64512   ;;  %s269_s23 = int_to_ptr.vmem [resolvable:$true] %s268_s23 }
   0xf   :  { %v80_v8 = vand.u32 %v284_v5, %v78_v4  ;;  %v351_v16 = vld [vmem:[%s569_s3] sm:$0xff]  ;;  %v366_v17 = vld [vmem:[%s571_s5 + $0x38] sm:$0xff]  ;;  %v365_v18 = vld [vmem:[%s571_s5 + $0x30] sm:$0xff] }
  0x10   :  { %248 = vmatpush.bf16.msra.mxu2 %v366_v17  ;;  %v364_v19 = vld [vmem:[%s571_s5 + $0x28] sm:$0xff]  ;;  %v363_v20 = vld [vmem:[%s571_s5 + $0x20] sm:$0xff]  ;;  %v362_v21 = vld [vmem:[%s571_s5 + $0x18] sm:$0xff] }
  0x11   :  { %89 = vmatpush.bf16.msra.mxu0 %v80_v8  ;;  %166 = vmatpush.bf16.msra.mxu1 %v357_v9  ;;  %v361_v22 = vld [vmem:[%s571_s5 + $0x10] sm:$0xff]  ;;  %v373_v23 = vld [vmem:[%s568_s2] ss:$0 sm:$0xff]  ;;  %v360_v29 = vld [vmem:[%s571_s5 + $0x8] sm:$0xff] }
  0x12   :  { %v359_v30 = vld [vmem:[%s571_s5] sm:$0xff]  ;;  %s270_s5 = sshll.u32 %s573_s7, 4  ;;  %s271_s5 = int_to_ptr.hbm [resolvable:$true] %s270_s5 }
  0x13   :  { %v374_v31 = vld [vmem:[%s570_s4] ss:$0 sm:$0xff] }
  0x14   :  { %285 = vmatmul.msk.bf16.vlgmr.msra.gmra.mxu0 %vm71_vm2, %v59_v10  ;;  %249 = vmatpush.bf16.msra.mxu2 %v365_v18  ;;  %v375_v37 = vld [vmem:[%s572_s6] ss:$0 sm:$0xff] }
  0x15   :  { %167 = vmatpush.bf16.msra.mxu1 %v356_v11 }
  0x18   :  { %250 = vmatpush.bf16.msra.mxu2 %v364_v19 }
  0x19   :  { %168 = vmatpush.bf16.msra.mxu1 %v355_v12 }
  0x1c   :  { %251 = vmatpush.bf16.msra.mxu2 %v363_v20 }
  0x1d   :  { %169 = vmatpush.bf16.msra.mxu1 %v354_v13 }
  0x20   :  { %252 = vmatpush.bf16.msra.mxu2 %v362_v21 }
  0x21   :  { %170 = vmatpush.bf16.msra.mxu1 %v353_v14 }
  0x24   :  { %253 = vmatpush.bf16.msra.mxu2 %v361_v22 }
  0x25   :  { %171 = vmatpush.bf16.msra.mxu1 %v352_v15 }
  0x28   :  { %254 = vmatpush.bf16.msra.mxu2 %v360_v29 }
  0x29   :  { %172 = vmatpush.bf16.msra.mxu1 %v351_v16 }
  0x2c   :  { %255 = vmatpush.bf16.msra.mxu2 %v359_v30 }
  0x91   :  { %v91_v24 = vpop.f32.mrf.mxu0 }
  0x92   :  { %v92_v25 = vadd.f32 %v373_v23, %v91_v24 }
  0x94   :  { %v95_v26 = vmax.f32 %v92_v25, 0.0 }
  0x96   :  { %v96_v27 = vpack.c.bf16 %v95_v26, %v95_v26 }
  0x98   :  { %173 = vmatmul.bf16.vlgmr.msra.gmra.mxu1 %v96_v27 }
  0x99   :  { %v93_v28 = vpop.f32.mrf.mxu0 }
 0x115   :  { %v174_v32 = vpop.f32.mrf.mxu1 }
 0x116   :  { %v175_v33 = vadd.f32 %v374_v31, %v174_v32 }
 0x118   :  { %v178_v34 = vmax.f32 %v175_v33, 0.0 }
 0x11a   :  { %v179_v35 = vpack.c.bf16 %v178_v34, %v178_v34 }
 0x11c   :  { %256 = vmatmul.bf16.vlgmr.msra.gmra.mxu2 %v179_v35 }
 0x11d   :  { %v176_v36 = vpop.f32.mrf.mxu1 }
 0x19f   :  { %v257_v38 = vpop.f32.mrf.mxu2 }
 0x1a0   :  { %v258_v39 = vadd.f32 %v375_v37, %v257_v38 }
 0x1a2   :  { %262 = vst.msk [vmem:[#allocation7] sm:$0xff] %vm261_vm3, %v258_v39 }
 0x1a3   :  { %273 = dma.vmem_to_hbm [thread:$0]  %s269_s23, 128, %s271_s5, [#allocation4]  }
 0x1a7   :  { %v259_v40 = vpop.f32.mrf.mxu2 }
 0x1a8   :  { %452 = dma.done.wait [#allocation4], 128  }
 0x1a9   :  { %453 = vsyncadd [#allocation4], 4294967168 }
 0x1aa   :  { %278 = vsyncpa [#allocation3], 1 }
 0x1ab   :  { %279 = vsyncpa [#allocation6], 1 }
 0x1ac   :  { %280 = vsyncpa [#allocation4], 1 }

</bundles_post_ra>
